<compile_context>
chip_gen: v5e
topology: v5e:2x2
jax: 0.10.0
libtpu: 0.0.40
codegen_flags: <defaults>
</compile_context>

<pallas_src>
import jax
import jax.numpy as jnp
from jax import lax
from jax.experimental import pallas as pl
from jax.experimental.pallas import tpu as pltpu
import numpy as np


def task343_kernel(patches_ref, w1_ref, b1_ref, w2_ref, b2_ref, out_ref):
    # patches_ref: (N, 9*Cin, H*W)  im2col patches, row order (dy, dx, cin)
    # w1_ref:      (Cm, 9*Cin)      conv1 weights, col order (dy, dx, cin)
    # b1_ref:      (Cm, 1)
    # w2_ref:      (Cout, Cm)       1x1 conv weights
    # b2_ref:      (Cout, 1)
    # out_ref:     (N, Cout, H*W)   lane-dense (H*W on the lane axis)
    N = patches_ref.shape[0]
    K9 = patches_ref.shape[1]
    HW = patches_ref.shape[2]
    Cm = w1_ref.shape[0]
    Cout = w2_ref.shape[0]
    Cin = K9 // 9

    w1 = w1_ref[...]                                   # (Cm, 9*Cin)
    w2 = w2_ref[...]                                   # (Cout, Cm)
    # Hoist bias broadcasts out of the batch loop (JAX does not CSE broadcasts).
    b1 = jnp.broadcast_to(b1_ref[...], (Cm, HW))
    b2 = jnp.broadcast_to(b2_ref[...], (Cout, HW))

    for n in range(N):  # static, tiny batch -> unrolled
        p = patches_ref[n]                             # (9*Cin, H*W)
        # conv1 as one MXU matmul (K = 9*Cin), f32 accumulation.
        h = jnp.dot(w1, p, preferred_element_type=jnp.float32) + b1
        h = jnp.maximum(h, 0.0)                        # ReLU
        # TODO(synk): Dropout2d(p=0.1) is stochastic only in train mode; this
        # kernel implements eval-mode semantics (identity).
        y = jnp.dot(w2, h, preferred_element_type=jnp.float32) + b2
        # Residual: the center tap (dy=1, dx=1) of the im2col buffer is x itself
        # (requires Cin == Cout, which the module guarantees: both are 10).
        res = p[4 * Cin:4 * Cin + Cout, :]             # (Cout, H*W)
        out_ref[n] = (res + y).astype(out_ref.dtype)


@jax.jit
def task343_forward(x_nchw, w1_hwio, b1, w2_io, b2):
    """x_nchw: (N, 10, H, W) float32. Returns (N, 10, H, W)."""
    N, Cin, H, W = x_nchw.shape
    Cm = w1_hwio.shape[3]
    Cout = w2_io.shape[1]
    assert Cin == Cout, "residual path requires Cin == Cout"
    HW = H * W
    K9 = 9 * Cin

    # im2col in the wrapper (single fused XLA op): (N, 9*Cin, H*W),
    # row order along axis 1 is (dy, dx, cin); padding=1 (SAME).
    xpad = jnp.pad(x_nchw, ((0, 0), (0, 0), (1, 1), (1, 1)))
    taps = [xpad[:, :, dy:dy + H, dx:dx + W]
            for dy in range(3) for dx in range(3)]      # each (N, Cin, H, W)
    patches = jnp.stack(taps, axis=1).reshape(N, K9, HW)

    # Reorder conv1 weights (HWIO) -> (Cm, 9*Cin) with matching (dy, dx, cin)
    # ordering; 1x1 conv weights -> (Cout, Cm). Tiny, done once.
    w1_r = jnp.transpose(w1_hwio, (3, 0, 1, 2)).reshape(Cm, K9)
    w2_r = jnp.transpose(w2_io)                          # (Cout, Cm)
    b1_2d = b1.reshape(Cm, 1)
    b2_2d = b2.reshape(Cout, 1)

    out = pl.pallas_call(
        task343_kernel,
        out_shape=jax.ShapeDtypeStruct((N, Cout, HW), x_nchw.dtype),
        grid=(1,),  # single invocation; whole problem fits VMEM easily
        in_specs=[
            pl.BlockSpec((N, K9, HW), lambda i: (0, 0, 0)),
            pl.BlockSpec((Cm, K9), lambda i: (0, 0)),
            pl.BlockSpec((Cm, 1), lambda i: (0, 0)),
            pl.BlockSpec((Cout, Cm), lambda i: (0, 0)),
            pl.BlockSpec((Cout, 1), lambda i: (0, 0)),
        ],
        out_specs=pl.BlockSpec((N, Cout, HW), lambda i: (0, 0, 0)),
    )(patches, w1_r, b1_2d, w2_r, b2_2d)

    # (N, Cout, H*W) -> (N, Cout, H, W): contiguity-preserving reshape (free).
    return out.reshape(N, Cout, H, W)


def reference_forward(x_nchw, w1_hwio, b1, w2_io, b2):
    """Pure-JAX reference (eval-mode dropout = identity), NCHW end-to-end."""
    y = lax.conv_general_dilated(
        x_nchw, w1_hwio, window_strides=(1, 1), padding="SAME",
        dimension_numbers=("NCHW", "HWIO", "NCHW"),
    ) + b1[None, :, None, None]
    y = jnp.maximum(y, 0.0)
    y = jnp.einsum("nchw,co->nohw", y, w2_io) + b2[None, :, None, None]
    return x_nchw + y


if __name__ == "__main__":
    # Shapes implied by the module: Cin = Cout = 10, hidden size = 16.
    N, Cin, H, W = 2, 10, 16, 16
    Cm, Cout = 16, 10

    key = jax.random.PRNGKey(0)
    kx, kw1, kb1, kw2, kb2 = jax.random.split(key, 5)

    x = jax.random.normal(kx, (N, Cin, H, W), dtype=jnp.float32)
    # Deterministic synthetic parameter init (HWIO layout for conv1).
    w1 = jax.random.normal(kw1, (3, 3, Cin, Cm), dtype=jnp.float32) * 0.1
    b1 = jax.random.normal(kb1, (Cm,), dtype=jnp.float32) * 0.1
    w2 = jax.random.normal(kw2, (Cm, Cout), dtype=jnp.float32) * 0.1
    b2 = jax.random.normal(kb2, (Cout,), dtype=jnp.float32) * 0.1

    out = jax.block_until_ready(task343_forward(x, w1, b1, w2, b2))
    ref = jax.block_until_ready(reference_forward(x, w1, b1, w2, b2))

    assert out.shape == (N, Cout, H, W)
    assert np.allclose(np.asarray(out), np.asarray(ref), atol=1e-4, rtol=1e-4)

    print("KERNEL_OK")
</pallas_src>

<mosaic_0001>
module attributes {stable_mosaic.version = 11 : i64} {
  func.func @task343_kernel(%arg0: i32, %arg1: memref<2x90x256xf32, #tpu.memory_space<vmem>>, %arg2: memref<16x90xf32, #tpu.memory_space<vmem>>, %arg3: memref<16x1xf32, #tpu.memory_space<vmem>>, %arg4: memref<10x16xf32, #tpu.memory_space<vmem>>, %arg5: memref<10x1xf32, #tpu.memory_space<vmem>>, %arg6: memref<2x10x256xf32, #tpu.memory_space<vmem>>) attributes {dimension_semantics = [#tpu.dimension_semantics<arbitrary>], iteration_bounds = array<i64: 1>, scalar_prefetch = 0 : i64, scratch_operands = 0 : i64, tpu.core_type = #tpu.core_type<tc>, window_params = [{pipeline_mode = #tpu.pipeline_mode<synchronous>, transform_indices = @transform_0, window_bounds = array<i64: 2, 90, 256>}, {pipeline_mode = #tpu.pipeline_mode<synchronous>, transform_indices = @transform_1, window_bounds = array<i64: 16, 90>}, {pipeline_mode = #tpu.pipeline_mode<synchronous>, transform_indices = @transform_2, window_bounds = array<i64: 16, 1>}, {pipeline_mode = #tpu.pipeline_mode<synchronous>, transform_indices = @transform_3, window_bounds = array<i64: 10, 16>}, {pipeline_mode = #tpu.pipeline_mode<synchronous>, transform_indices = @transform_4, window_bounds = array<i64: 10, 1>}, {pipeline_mode = #tpu.pipeline_mode<synchronous>, transform_indices = @transform_5, window_bounds = array<i64: 2, 10, 256>}]} {
    %c0 = arith.constant 0 : index
    %c0_0 = arith.constant 0 : index
    %0 = vector.load %arg2[%c0, %c0_0] : memref<16x90xf32, #tpu.memory_space<vmem>>, vector<16x90xf32>
    %c0_1 = arith.constant 0 : index
    %c0_2 = arith.constant 0 : index
    %1 = vector.load %arg4[%c0_1, %c0_2] : memref<10x16xf32, #tpu.memory_space<vmem>>, vector<10x16xf32>
    %c0_3 = arith.constant 0 : index
    %c0_4 = arith.constant 0 : index
    %2 = vector.load %arg3[%c0_3, %c0_4] : memref<16x1xf32, #tpu.memory_space<vmem>>, vector<16x1xf32>
    %3 = vector.shape_cast %2 : vector<16x1xf32> to vector<16x1xf32>
    %4 = vector.broadcast %3 : vector<16x1xf32> to vector<16x256xf32>
    %c0_5 = arith.constant 0 : index
    %c0_6 = arith.constant 0 : index
    %5 = vector.load %arg5[%c0_5, %c0_6] : memref<10x1xf32, #tpu.memory_space<vmem>>, vector<10x1xf32>
    %6 = vector.shape_cast %5 : vector<10x1xf32> to vector<10x1xf32>
    %7 = vector.broadcast %6 : vector<10x1xf32> to vector<10x256xf32>
    %c0_7 = arith.constant 0 : index
    %c0_8 = arith.constant 0 : index
    %c0_9 = arith.constant 0 : index
    %8 = vector.load %arg1[%c0_7, %c0_8, %c0_9] : memref<2x90x256xf32, #tpu.memory_space<vmem>>, vector<1x90x256xf32>
    %9 = vector.shape_cast %8 : vector<1x90x256xf32> to vector<90x256xf32>
    %cst = arith.constant dense<0.000000e+00> : vector<16x256xf32>
    %10 = tpu.matmul %0, %9, %cst {dimension_numbers = #tpu.dot_dimension_numbers<[1], [0], [0], [1], [0, 0, 1, 1], [], []>} : vector<16x90xf32>, vector<90x256xf32>, vector<16x256xf32> -> vector<16x256xf32>
    %11 = arith.addf %10, %4 : vector<16x256xf32>
    %cst_10 = arith.constant 0.000000e+00 : f32
    %12 = vector.broadcast %cst_10 : f32 to vector<16x256xf32>
    %13 = arith.maximumf %11, %12 : vector<16x256xf32>
    %cst_11 = arith.constant dense<0.000000e+00> : vector<10x256xf32>
    %14 = tpu.matmul %1, %13, %cst_11 {dimension_numbers = #tpu.dot_dimension_numbers<[1], [0], [0], [1], [0, 0, 1, 1], [], []>} : vector<10x16xf32>, vector<16x256xf32>, vector<10x256xf32> -> vector<10x256xf32>
    %15 = arith.addf %14, %7 : vector<10x256xf32>
    %16 = vector.extract_strided_slice %9 {offsets = [40, 0], sizes = [10, 256], strides = [1, 1]} : vector<90x256xf32> to vector<10x256xf32>
    %17 = arith.addf %16, %15 : vector<10x256xf32>
    %c0_12 = arith.constant 0 : index
    %c0_13 = arith.constant 0 : index
    %c0_14 = arith.constant 0 : index
    %18 = vector.load %arg6[%c0_12, %c0_13, %c0_14] : memref<2x10x256xf32, #tpu.memory_space<vmem>>, vector<1x10x256xf32>
    %19 = vector.shape_cast %18 : vector<1x10x256xf32> to vector<10x256xf32>
    %20 = vector.shape_cast %17 : vector<10x256xf32> to vector<1x10x256xf32>
    tpu.vector_store %arg6[%c0_12, %c0_13, %c0_14], %20 {strides = array<i32>} : memref<2x10x256xf32, #tpu.memory_space<vmem>>, vector<1x10x256xf32>,
    %c1 = arith.constant 1 : index
    %c0_15 = arith.constant 0 : index
    %c0_16 = arith.constant 0 : index
    %21 = vector.load %arg1[%c1, %c0_15, %c0_16] : memref<2x90x256xf32, #tpu.memory_space<vmem>>, vector<1x90x256xf32>
    %22 = vector.shape_cast %21 : vector<1x90x256xf32> to vector<90x256xf32>
    %cst_17 = arith.constant dense<0.000000e+00> : vector<16x256xf32>
    %23 = tpu.matmul %0, %22, %cst_17 {dimension_numbers = #tpu.dot_dimension_numbers<[1], [0], [0], [1], [0, 0, 1, 1], [], []>} : vector<16x90xf32>, vector<90x256xf32>, vector<16x256xf32> -> vector<16x256xf32>
    %24 = arith.addf %23, %4 : vector<16x256xf32>
    %cst_18 = arith.constant 0.000000e+00 : f32
    %25 = vector.broadcast %cst_18 : f32 to vector<16x256xf32>
    %26 = arith.maximumf %24, %25 : vector<16x256xf32>
    %cst_19 = arith.constant dense<0.000000e+00> : vector<10x256xf32>
    %27 = tpu.matmul %1, %26, %cst_19 {dimension_numbers = #tpu.dot_dimension_numbers<[1], [0], [0], [1], [0, 0, 1, 1], [], []>} : vector<10x16xf32>, vector<16x256xf32>, vector<10x256xf32> -> vector<10x256xf32>
    %28 = arith.addf %27, %7 : vector<10x256xf32>
    %29 = vector.extract_strided_slice %22 {offsets = [40, 0], sizes = [10, 256], strides = [1, 1]} : vector<90x256xf32> to vector<10x256xf32>
    %30 = arith.addf %29, %28 : vector<10x256xf32>
    %c1_20 = arith.constant 1 : index
    %c0_21 = arith.constant 0 : index
    %c0_22 = arith.constant 0 : index
    %31 = vector.load %arg6[%c1_20, %c0_21, %c0_22] : memref<2x10x256xf32, #tpu.memory_space<vmem>>, vector<1x10x256xf32>
    %32 = vector.shape_cast %31 : vector<1x10x256xf32> to vector<10x256xf32>
    %33 = vector.shape_cast %30 : vector<10x256xf32> to vector<1x10x256xf32>
    tpu.vector_store %arg6[%c1_20, %c0_21, %c0_22], %33 {strides = array<i32>} : memref<2x10x256xf32, #tpu.memory_space<vmem>>, vector<1x10x256xf32>,
    return
  }
  func.func @transform_0(%arg0: i32) -> (i32, i32, i32) {
    %c0_i32 = arith.constant 0 : i32
    %c0_i32_0 = arith.constant 0 : i32
    %c0_i32_1 = arith.constant 0 : i32
    %c0_i32_2 = arith.constant 0 : i32
    return %c0_i32, %c0_i32_0, %c0_i32_1 : i32, i32, i32
  }
  func.func @transform_1(%arg0: i32) -> (i32, i32) {
    %c0_i32 = arith.constant 0 : i32
    %c0_i32_0 = arith.constant 0 : i32
    %c0_i32_1 = arith.constant 0 : i32
    return %c0_i32, %c0_i32_0 : i32, i32
  }
  func.func @transform_2(%arg0: i32) -> (i32, i32) {
    %c0_i32 = arith.constant 0 : i32
    %c0_i32_0 = arith.constant 0 : i32
    %c0_i32_1 = arith.constant 0 : i32
    return %c0_i32, %c0_i32_0 : i32, i32
  }
  func.func @transform_3(%arg0: i32) -> (i32, i32) {
    %c0_i32 = arith.constant 0 : i32
    %c0_i32_0 = arith.constant 0 : i32
    %c0_i32_1 = arith.constant 0 : i32
    return %c0_i32, %c0_i32_0 : i32, i32
  }
  func.func @transform_4(%arg0: i32) -> (i32, i32) {
    %c0_i32 = arith.constant 0 : i32
    %c0_i32_0 = arith.constant 0 : i32
    %c0_i32_1 = arith.constant 0 : i32
    return %c0_i32, %c0_i32_0 : i32, i32
  }
  func.func @transform_5(%arg0: i32) -> (i32, i32, i32) {
    %c0_i32 = arith.constant 0 : i32
    %c0_i32_0 = arith.constant 0 : i32
    %c0_i32_1 = arith.constant 0 : i32
    %c0_i32_2 = arith.constant 0 : i32
    return %c0_i32, %c0_i32_0, %c0_i32_1 : i32, i32, i32
  }
}

</mosaic_0001>

<bundles_post_ra>
// kernel: task343_forward.1
= control target key start
LH: loop header
LB: loop body
LE: loop exit
PB: predicated region body
PF: predicated region fallthrough
CT: control target
= control target key end

     0   :  { %vm79_vm0 = vcmask 1041408   ;;  %v392_v3 = vmov 0   ;;  %vm72_vm1 = vcmask 736256   ;;  %vm136_vm2 = vcmask 130048   ;;  %s703_s0 = inlined_call_operand.vmem [shape: f32[2,90,256], index: 0, kind: input, shape index: {}]   ;;  %s704_s2 = inlined_call_operand.vmem [shape: f32[16,1], index: 2, kind: input, shape index: {}]   ;;  %s705_s1 = inlined_call_operand.vmem [shape: f32[16,90], index: 1, kind: input, shape index: {}]   ;;  %s706_s4 = inlined_call_operand.vmem [shape: f32[10,1], index: 4, kind: input, shape index: {}]   ;;  %s707_s3 = inlined_call_operand.vmem [shape: f32[10,16], index: 3, kind: input, shape index: {}]   ;;  %s708_s5 = inlined_call_operand.vmem [shape: f32[2,10,256], index: 5, kind: output, shape index: {}]  }
   0x1   :  { %v70_v0 = vld [vmem:[%s703_s0 + $0xb0] sm:$0x3]  ;;  %v71_v1 = vld [vmem:[%s703_s0 + $0xb8] sm:$0x3]  ;;  %v68_v2 = vld [vmem:[%s703_s0 + $0xa0] sm:$0xff]  ;;  %390 = vset.pattern.permute.xlu0 %v392_v3  ;;  %391 = vset.pattern.permute.xlu1 %v392_v3 }
   0x2   :  { %337 = vmatpush.msk.msra.mxu0 %vm79_vm0, %v70_v0  ;;  %340 = vmatpush.msk.msra.mxu1 %vm79_vm0, %v71_v1  ;;  %v69_v4 = vld [vmem:[%s703_s0 + $0xa8] sm:$0xff]  ;;  %v66_v5 = vld [vmem:[%s703_s0 + $0x90] sm:$0xff]  ;;  %v67_v6 = vld [vmem:[%s703_s0 + $0x98] sm:$0xff] }
   0x3   :  { %v64_v7 = vld [vmem:[%s703_s0 + $0x80] sm:$0xff]  ;;  %v65_v8 = vld [vmem:[%s703_s0 + $0x88] sm:$0xff]  ;;  %v62_v9 = vld [vmem:[%s703_s0 + $0x70] sm:$0xff] }
   0x4   :  { %91 = vmatpush.msra.mxu0 %v68_v2  ;;  %114 = vmatpush.msra.mxu1 %v69_v4  ;;  %v63_v10 = vld [vmem:[%s703_s0 + $0x78] sm:$0xff]  ;;  %v458_v11 = vld [vmem:[%s703_s0 + $0x60] sm:$0xff]  ;;  %v463_v12 = vld [vmem:[%s703_s0 + $0x68] sm:$0xff] }
   0x5   :  { %v25_v13 = vld [vmem:[%s704_s2 + $0x8] sm:$0xff]  ;;  %v471_v14 = vld [vmem:[%s703_s0 + $0x50] sm:$0xff]  ;;  %v476_v15 = vld [vmem:[%s703_s0 + $0x58] sm:$0xff] }
   0x6   :  { %92 = vmatpush.msra.mxu0 %v66_v5  ;;  %115 = vmatpush.msra.mxu1 %v67_v6  ;;  %v56_v16 = vld [vmem:[%s703_s0 + $0x40] sm:$0xff]  ;;  %v57_v17 = vld [vmem:[%s703_s0 + $0x48] sm:$0xff]  ;;  %v54_v18 = vld [vmem:[%s703_s0 + $0x30] sm:$0xff] }
   0x7   :  { %33 = vperm.xlu0 %390, %v25_v13   ;;  %v55_v19 = vld [vmem:[%s703_s0 + $0x38] sm:$0xff]  ;;  %v24_v20 = vld [vmem:[%s704_s2] sm:$0xff]  ;;  %v53_v22 = vld [vmem:[%s703_s0 + $0x28] sm:$0xff] }
   0x8   :  { %93 = vmatpush.msra.mxu0 %v64_v7  ;;  %116 = vmatpush.msra.mxu1 %v65_v8  ;;  %v52_v21 = vld [vmem:[%s703_s0 + $0x20] sm:$0xff]  ;;  %v50_v23 = vld [vmem:[%s703_s0 + $0x10] sm:$0xff]  ;;  %v51_v24 = vld [vmem:[%s703_s0 + $0x18] sm:$0xff] }
   0x9   :  { %v48_v25 = vld [vmem:[%s703_s0] sm:$0xff]  ;;  %v49_v26 = vld [vmem:[%s703_s0 + $0x8] sm:$0xff]  ;;  %v369_v44 = vld [vmem:[%s703_s0 + $0x170] sm:$0x3] }
   0xa   :  { %94 = vmatpush.msra.mxu0 %v62_v9  ;;  %117 = vmatpush.msra.mxu1 %v63_v10  ;;  %v518_v27 = vld [vmem:[%s705_s1] sm:$0xff]  ;;  %v527_v28 = vld [vmem:[%s705_s1 + $0x8] sm:$0xff]  ;;  %v370_v45 = vld [vmem:[%s703_s0 + $0x178] sm:$0x3] }
   0xb   :  { %v36_v33 = vld [vmem:[%s706_s4] sm:$0xff]  ;;  %v368_v48 = vld [vmem:[%s703_s0 + $0x168] sm:$0xff]  ;;  %v365_v50 = vld [vmem:[%s703_s0 + $0x150] sm:$0xff] }
   0xc   :  { %95 = vmatpush.msra.mxu0 %v458_v11  ;;  %118 = vmatpush.msra.mxu1 %v463_v12  ;;  %v553_v46 = vld [vmem:[%s707_s3] sm:$0xff]  ;;  %v37_v49 = vld [vmem:[%s706_s4 + $0x8] sm:$0x3]  ;;  %v366_v51 = vld [vmem:[%s703_s0 + $0x158] sm:$0xff] }
   0xd   :  { %40 = vperm.xlu1 %391, %v36_v33   ;;  %v367_v47 = vld [vmem:[%s703_s0 + $0x160] sm:$0xff]  ;;  %v364_v53 = vld [vmem:[%s703_s0 + $0x148] sm:$0xff]  ;;  %v361_v54 = vld [vmem:[%s703_s0 + $0x130] sm:$0xff] }
   0xe   :  { %96 = vmatpush.msra.mxu0 %v471_v14  ;;  %119 = vmatpush.msra.mxu1 %v476_v15  ;;  %v363_v52 = vld [vmem:[%s703_s0 + $0x140] sm:$0xff]  ;;  %v362_v55 = vld [vmem:[%s703_s0 + $0x138] sm:$0xff]  ;;  %v591_v56 = vld [vmem:[%s707_s3 + $0x8] sm:$0x3] }
   0xf   :  { %28 = vperm.xlu0 %390, %v24_v20   ;;  %v596_v57 = vld [vmem:[%s703_s0 + $0x120] sm:$0xff]  ;;  %v601_v58 = vld [vmem:[%s703_s0 + $0x128] sm:$0xff]  ;;  %v606_v59 = vld [vmem:[%s703_s0 + $0x110] sm:$0xff] }
  0x10   :  { %97 = vmatpush.msra.mxu0 %v56_v16  ;;  %120 = vmatpush.msra.mxu1 %v57_v17  ;;  %v611_v60 = vld [vmem:[%s703_s0 + $0x118] sm:$0xff]  ;;  %v355_v61 = vld [vmem:[%s703_s0 + $0x100] sm:$0xff]  ;;  %v356_v62 = vld [vmem:[%s703_s0 + $0x108] sm:$0xff] }
  0x11   :  { %v353_v63 = vld [vmem:[%s703_s0 + $0xf0] sm:$0xff]  ;;  %v354_v0 = vld [vmem:[%s703_s0 + $0xf8] sm:$0xff]  ;;  %v351_v1 = vld [vmem:[%s703_s0 + $0xe0] sm:$0xff] }
  0x12   :  { %98 = vmatpush.msra.mxu0 %v54_v18  ;;  %121 = vmatpush.msra.mxu1 %v55_v19  ;;  %v352_v2 = vld [vmem:[%s703_s0 + $0xe8] sm:$0xff]  ;;  %v349_v3 = vld [vmem:[%s703_s0 + $0xd0] sm:$0xff]  ;;  %v350_v4 = vld [vmem:[%s703_s0 + $0xd8] sm:$0xff] }
  0x13   :  { %v347_v5 = vld [vmem:[%s703_s0 + $0xc0] sm:$0xff]  ;;  %v348_v6 = vld [vmem:[%s703_s0 + $0xc8] sm:$0xff] }
  0x14   :  { %99 = vmatpush.msra.mxu0 %v52_v21  ;;  %122 = vmatpush.msra.mxu1 %v53_v22 }
  0x15   :  { %45 = vperm.xlu1 %391, %v37_v49  }
  0x16   :  { %100 = vmatpush.msra.mxu0 %v50_v23  ;;  %123 = vmatpush.msra.mxu1 %v51_v24 }
  0x18   :  { %101 = vmatpush.msra.mxu0 %v48_v25  ;;  %124 = vmatpush.msra.mxu1 %v49_v26 }
  0x19   :  { %338 = vmatmul.msk.f32.vlgmr.msra.gmra.mxu0 %vm72_vm1, %v518_v27  ;;  %341 = vmatmul.msk.f32.vlgmr.msra.gmra.mxu1 %vm72_vm1, %v518_v27 }
  0x21   :  { %339 = vmatmul.msk.f32.gmra.mxu0 %vm72_vm1, %v527_v28  ;;  %342 = vmatmul.msk.f32.gmra.mxu1 %vm72_vm1, %v527_v28 }
  0x79   :  { %v533_v29 = vpop.permute.xlu0 %33 }
  0x7f   :  { %v41_v7 = vpop.permute.xlu1 %40 }
  0x81   :  { %v535_v32 = vpop.permute.xlu0 %28 }
  0x87   :  { %v46_v18 = vpop.permute.xlu1 %45 }
  0x96   :  { %v103_v30 = vpop.f32.mrf.mxu0  ;;  %v126_v31 = vpop.f32.mrf.mxu1 }
  0x97   :  { %v104_v36 = vadd.f32 %v103_v30, %v535_v32  ;;  %v127_v37 = vadd.f32 %v126_v31, %v535_v32 }
  0x99   :  { %v132_v42 = vmax.f32 %v104_v36, 0.0  ;;  %v133_v43 = vmax.f32 %v127_v37, 0.0 }
  0x9e   :  { %v106_v34 = vpop.f32.mrf.mxu0  ;;  %v129_v35 = vpop.f32.mrf.mxu1 }
  0x9f   :  { %v107_v38 = vadd.f32 %v106_v34, %v533_v29  ;;  %v130_v39 = vadd.f32 %v129_v35, %v533_v29 }
  0xa1   :  { %v134_v40 = vmax.f32 %v107_v38, 0.0  ;;  %v135_v41 = vmax.f32 %v130_v39, 0.0 }
  0xa3   :  { %157 = vmatpush.msra.mxu2 %v134_v40  ;;  %180 = vmatpush.msra.mxu3 %v135_v41 }
  0xa5   :  { %158 = vmatpush.msra.mxu2 %v132_v42  ;;  %181 = vmatpush.msra.mxu3 %v133_v43 }
  0xa6   :  { %343 = vmatmul.msk.f32.vlgmr.msra.gmra.mxu2 %vm136_vm2, %v553_v46  ;;  %345 = vmatmul.msk.f32.vlgmr.msra.gmra.mxu3 %vm136_vm2, %v553_v46 }
  0xa7   :  { %371 = vmatpush.msk.msrb.mxu2 %vm79_vm0, %v369_v44  ;;  %374 = vmatpush.msk.msrb.mxu3 %vm79_vm0, %v370_v45 }
  0xa9   :  { %233 = vmatpush.msrb.mxu2 %v367_v47  ;;  %256 = vmatpush.msrb.mxu3 %v368_v48 }
  0xab   :  { %234 = vmatpush.msrb.mxu2 %v365_v50  ;;  %257 = vmatpush.msrb.mxu3 %v366_v51 }
  0xad   :  { %235 = vmatpush.msrb.mxu2 %v363_v52  ;;  %258 = vmatpush.msrb.mxu3 %v364_v53 }
  0xae   :  { %344 = vmatmul.msk.f32.gmra.mxu2 %vm136_vm2, %v591_v56  ;;  %346 = vmatmul.msk.f32.gmra.mxu3 %vm136_vm2, %v591_v56 }
  0xaf   :  { %236 = vmatpush.msrb.mxu2 %v361_v54  ;;  %259 = vmatpush.msrb.mxu3 %v362_v55 }
  0xb1   :  { %237 = vmatpush.msrb.mxu2 %v596_v57  ;;  %260 = vmatpush.msrb.mxu3 %v601_v58 }
  0xb3   :  { %238 = vmatpush.msrb.mxu2 %v606_v59  ;;  %261 = vmatpush.msrb.mxu3 %v611_v60 }
  0xb5   :  { %239 = vmatpush.msrb.mxu2 %v355_v61  ;;  %262 = vmatpush.msrb.mxu3 %v356_v62 }
  0xb7   :  { %240 = vmatpush.msrb.mxu2 %v353_v63  ;;  %263 = vmatpush.msrb.mxu3 %v354_v0 }
  0xb9   :  { %241 = vmatpush.msrb.mxu2 %v351_v1  ;;  %264 = vmatpush.msrb.mxu3 %v352_v2 }
  0xbb   :  { %242 = vmatpush.msrb.mxu2 %v349_v3  ;;  %265 = vmatpush.msrb.mxu3 %v350_v4 }
  0xbd   :  { %243 = vmatpush.msrb.mxu2 %v347_v5  ;;  %266 = vmatpush.msrb.mxu3 %v348_v6 }
  0xbe   :  { %372 = vmatmul.msk.f32.vlgmr.msrb.gmra.mxu2 %vm72_vm1, %v518_v27  ;;  %375 = vmatmul.msk.f32.vlgmr.msrb.gmra.mxu3 %vm72_vm1, %v518_v27 }
  0xc6   :  { %373 = vmatmul.msk.f32.gmra.mxu2 %vm72_vm1, %v527_v28  ;;  %376 = vmatmul.msk.f32.gmra.mxu3 %vm72_vm1, %v527_v28 }
 0x129   :  { %v160_v8 = vpop.f32.mrf.mxu2  ;;  %v183_v9 = vpop.f32.mrf.mxu3 }
 0x12a   :  { %v161_v10 = vadd.f32 %v160_v8, %v41_v7  ;;  %v184_v13 = vadd.f32 %v183_v9, %v41_v7 }
 0x12c   :  { %v189_v16 = vadd.f32 %v161_v10, %v471_v14  ;;  %v190_v17 = vadd.f32 %v184_v13, %v476_v15 }
 0x12e   :  { %193 = vst [vmem:[%s708_s5] sm:$0xff] %v189_v16 }
 0x12f   :  { %194 = vst [vmem:[%s708_s5 + $0x8] sm:$0xff] %v190_v17 }
 0x131   :  { %v163_v19 = vpop.f32.mrf.mxu2  ;;  %v186_v20 = vpop.f32.mrf.mxu3 }
 0x132   :  { %v164_v21 = vadd.f32 %v163_v19, %v46_v18  ;;  %v187_v22 = vadd.f32 %v186_v20, %v46_v18 }
 0x134   :  { %v191_v23 = vadd.f32 %v164_v21, %v458_v11  ;;  %v192_v24 = vadd.f32 %v187_v22, %v463_v12 }
 0x136   :  { %195 = vst [vmem:[%s708_s5 + $0x10] sm:$0x3] %v191_v23 }
 0x137   :  { %196 = vst [vmem:[%s708_s5 + $0x18] sm:$0x3] %v192_v24 }
 0x141   :  { %v245_v14 = vpop.f32.mrf.mxu2  ;;  %v268_v15 = vpop.f32.mrf.mxu3 }
 0x142   :  { %v246_v27 = vadd.f32 %v245_v14, %v535_v32  ;;  %v269_v12 = vadd.f32 %v268_v15, %v535_v32 }
 0x144   :  { %v274_v33 = vmax.f32 %v246_v27, 0.0  ;;  %v275_v34 = vmax.f32 %v269_v12, 0.0 }
 0x149   :  { %v248_v25 = vpop.f32.mrf.mxu2  ;;  %v271_v26 = vpop.f32.mrf.mxu3 }
 0x14a   :  { %v249_v28 = vadd.f32 %v248_v25, %v533_v29  ;;  %v272_v11 = vadd.f32 %v271_v26, %v533_v29 }
 0x14c   :  { %v276_v30 = vmax.f32 %v249_v28, 0.0  ;;  %v277_v31 = vmax.f32 %v272_v11, 0.0 }
 0x14e   :  { %292 = vmatpush.msrb.mxu0 %v276_v30  ;;  %385 = vmatpush.msra.mxu2 %v276_v30 }
 0x14f   :  { %315 = vmatpush.msrb.mxu1 %v277_v31  ;;  %387 = vmatpush.msra.mxu3 %v277_v31 }
 0x150   :  { %293 = vmatpush.msrb.mxu0 %v274_v33  ;;  %386 = vmatpush.msra.mxu2 %v274_v33 }
 0x151   :  { %316 = vmatpush.msrb.mxu1 %v275_v34  ;;  %388 = vmatpush.msra.mxu3 %v275_v34 }
 0x152   :  { %378 = vmatmul.msk.f32.vlgmr.msra.gmra.mxu2 %vm136_vm2, %v591_v56  ;;  %380 = vmatmul.msk.f32.vlgmr.msra.gmra.mxu3 %vm136_vm2, %v591_v56 }
 0x153   :  { %377 = vmatmul.msk.f32.vlgmr.msrb.gmra.mxu0 %vm136_vm2, %v553_v46  ;;  %379 = vmatmul.msk.f32.vlgmr.msrb.gmra.mxu1 %vm136_vm2, %v553_v46 }
 0x1d0   :  { %v295_v29 = vpop.f32.mrf.mxu0  ;;  %v318_v32 = vpop.f32.mrf.mxu1 }
 0x1d1   :  { %v296_v35 = vadd.f32 %v295_v29, %v41_v7  ;;  %v319_v36 = vadd.f32 %v318_v32, %v41_v7 }
 0x1d3   :  { %v324_v37 = vadd.f32 %v606_v59, %v296_v35  ;;  %v325_v38 = vadd.f32 %v611_v60, %v319_v36 }
 0x1d5   :  { %381 = vst [vmem:[%s708_s5 + $0x20] sm:$0xff] %v324_v37  ;;  %v298_v39 = vpop.f32.mrf.mxu2  ;;  %v321_v40 = vpop.f32.mrf.mxu3 }
 0x1d6   :  { %v299_v41 = vadd.f32 %v298_v39, %v46_v18  ;;  %382 = vst [vmem:[%s708_s5 + $0x28] sm:$0xff] %v325_v38  ;;  %v322_v42 = vadd.f32 %v321_v40, %v46_v18 }
 0x1d8   :  { %v326_v43 = vadd.f32 %v596_v57, %v299_v41  ;;  %v327_v44 = vadd.f32 %v601_v58, %v322_v42 }
 0x1da   :  { %383 = vst [vmem:[%s708_s5 + $0x30] sm:$0x3] %v326_v43 }
 0x1db   :  { %384 = vst [vmem:[%s708_s5 + $0x38] sm:$0x3] %v327_v44 }

</bundles_post_ra>
